<compile_context>
chip_gen: v5e
topology: v5e:2x2
jax: 0.10.0
libtpu: 0.0.40
codegen_flags: <defaults>
</compile_context>

<pallas_src>
import functools
import math

import jax
import jax.numpy as jnp
from jax.experimental import pallas as pl
from jax.experimental.pallas import tpu as pltpu

BN_EPS = 1e-5
LEAKY_SLOPE = 0.01      # PyTorch nn.LeakyReLU default
LANE = 128
MIN_TILE = 16           # bf16 sublane packing for the LHS


def _round_up(v, m):
    return ((v + m - 1) // m) * m


def _default_act_dtype():
    """bf16 elementwise chain only on generations with bf16 VALUs."""
    try:
        kind = jax.devices()[0].device_kind.lower()
    except Exception:  # pragma: no cover
        return jnp.float32
    if "v6" in kind or "v7" in kind or "tpu7" in kind:
        return jnp.bfloat16
    return jnp.float32  # v5e/v4: keep f32 elementwise, cast at the dot only


def _mlp_kernel(x_ref, *refs, act_dtype, out_dim):
    """Fused (Linear+BN-folded -> LeakyReLU) chain + final Linear on one tile.

    refs layout: (W_0, ..., W_L, bias_pack, out_ref)
      W_i       : (prev_pad_i, hid_pad_i) bf16, BN folded, lane-dense padded
      bias_pack : (L+1, max_hid) f32, row i = folded bias of layer i (0-padded)
      out_ref   : (TILE_B, out_dim) f32  (true output width, no lane padding)
    """
    out_ref = refs[-1]
    bias_ref = refs[-2]
    w_refs = refs[:-2]
    n_layers = len(w_refs)

    h = x_ref[...]                                   # bf16, pre-cast in wrapper
    for i, w_ref in enumerate(w_refs):
        w = w_ref[...]                               # bf16 weights (BN folded)
        out_f = w.shape[-1]
        # MXU matmul: bf16 x bf16 -> f32 accumulate.
        acc = jnp.dot(h, w, preferred_element_type=jnp.float32)
        acc = acc + bias_ref[i:i + 1, :out_f]        # folded bias, f32
        if i < n_layers - 1:
            a = acc.astype(act_dtype)                # bf16 on v6e/v7x, f32 on v5e
            # LeakyReLU (valid for 0 < slope < 1): one vmul + vmax.
            a = jnp.maximum(a, LEAKY_SLOPE * a)
            h = a.astype(jnp.bfloat16)               # next dot's LHS dtype
            # Dropout: identity in eval mode.
        else:
            h = acc                                  # final layer, f32
    # Store only the true output lanes (narrow but contiguous HBM writeback).
    out_ref[...] = h[:, :out_dim].astype(out_ref.dtype)


def init_params(key, input_dim, hidden_dims, output_dim):
    """PyTorch-style params: Linear U(-1/sqrt(fan_in), +), eval-mode BN stats."""
    params = []
    prev = input_dim
    for hd in hidden_dims:
        key, kw, kb, kg, kbt, km, kv = jax.random.split(key, 7)
        bound = 1.0 / math.sqrt(prev)
        w = jax.random.uniform(kw, (prev, hd), jnp.float32, -bound, bound)
        b = jax.random.uniform(kb, (1, hd), jnp.float32, -bound, bound)
        gamma = jax.random.uniform(kg, (1, hd), jnp.float32, 0.5, 1.5)
        beta = 0.1 * jax.random.normal(kbt, (1, hd), jnp.float32)
        running_mean = 0.1 * jax.random.normal(km, (1, hd), jnp.float32)
        running_var = jax.random.uniform(kv, (1, hd), jnp.float32, 0.5, 1.5)
        params += [w, b, gamma, beta, running_mean, running_var]
        prev = hd
    key, kw, kb = jax.random.split(key, 3)
    bound = 1.0 / math.sqrt(prev)
    w_out = jax.random.uniform(kw, (prev, output_dim), jnp.float32, -bound, bound)
    b_out = jax.random.uniform(kb, (1, output_dim), jnp.float32, -bound, bound)
    params += [w_out, b_out]
    return params


def fold_params(params, n_hidden):
    """Fold eval-mode BatchNorm into the preceding Linear, lane-pad, pack biases.

    Every layer's output width is padded to a multiple of 128 with zero
    columns (and the next layer's input rows padded with zeros), so all
    intermediates are full-lane vregs.  Folding is done in f32; only the
    folded product is cast to bf16.
    """
    ws, bs = [], []
    idx = 0
    prev_pad = None
    for _ in range(n_hidden):
        w, b, g, bt, mu, var = params[idx:idx + 6]
        idx += 6
        scale = g * jax.lax.rsqrt(var + BN_EPS)              # (1, hid)
        w_f = w * scale                                      # f32 column fold
        b_f = (b - mu) * scale + bt                          # (1, hid) f32
        in_dim, out_dim_l = w_f.shape
        in_pad = in_dim if prev_pad is None else prev_pad
        out_pad_l = _round_up(out_dim_l, LANE)
        w_p = jnp.zeros((in_pad, out_pad_l), jnp.float32)
        w_p = w_p.at[:in_dim, :out_dim_l].set(w_f)
        b_p = jnp.zeros((1, out_pad_l), jnp.float32).at[:, :out_dim_l].set(b_f)
        ws.append(w_p.astype(jnp.bfloat16))
        bs.append(b_p)
        prev_pad = out_pad_l

    w_out, b_out = params[idx], params[idx + 1]
    out_dim = w_out.shape[-1]
    out_pad = _round_up(out_dim, LANE)                       # lane-dense compute
    w_p = jnp.zeros((prev_pad, out_pad), jnp.float32)
    w_p = w_p.at[:w_out.shape[0], :out_dim].set(w_out)
    b_p = jnp.zeros((1, out_pad), jnp.float32).at[:, :out_dim].set(b_out)
    ws.append(w_p.astype(jnp.bfloat16))
    bs.append(b_p)

    max_hid = max(w.shape[-1] for w in ws)
    bias_pack = jnp.zeros((len(bs), max_hid), jnp.float32)
    for i, b in enumerate(bs):
        bias_pack = bias_pack.at[i, :b.shape[-1]].set(b[0])
    return ws, bias_pack, out_dim


def mlp_forward(x, weights, bias_pack, out_dim, *, tile_b=1024, act_dtype=None):
    """x: (B, input_dim) f32. weights/bias_pack from fold_params."""
    B, input_dim = x.shape
    if act_dtype is None:
        act_dtype = _default_act_dtype()

    # Batch tiling: multiple of 16 (bf16 LHS sublane packing), and at least
    # two grid steps when the batch allows it (v7x megacore sharding).
    tile_b = min(tile_b, _round_up(B, MIN_TILE))
    if B > MIN_TILE:
        tile_b = min(tile_b, _round_up(pl.cdiv(B, 2), MIN_TILE))
    tile_b = max(MIN_TILE, (tile_b // MIN_TILE) * MIN_TILE)
    n_tiles = pl.cdiv(B, tile_b)
    b_pad = n_tiles * tile_b

    # Pre-cast to bf16 (halves streamed x bytes, deletes in-kernel casts).
    x = x.astype(jnp.bfloat16)
    if b_pad != B:
        x = jnp.pad(x, ((0, b_pad - B), (0, 0)))

    x_spec = pl.BlockSpec((tile_b, input_dim), lambda i: (i, 0))
    w_specs = [pl.BlockSpec(w.shape, lambda i: (0, 0)) for w in weights]
    b_spec = pl.BlockSpec(bias_pack.shape, lambda i: (0, 0))
    out_spec = pl.BlockSpec((tile_b, out_dim), lambda i: (i, 0))

    # Actual VMEM footprint (double-buffered inputs + f32 intermediates),
    # clamped to <= 32 MiB so v7x (64 MiB physical) is never starved.
    w_bytes = sum(w.size * w.dtype.itemsize for w in weights)
    max_hid = max(w.shape[-1] for w in weights)
    vmem_need = (2 * (tile_b * input_dim * 2 + w_bytes + bias_pack.size * 4
                      + tile_b * out_dim * 4)
                 + 4 * tile_b * max_hid * 4)
    vmem_limit = int(min(max(vmem_need, 8 << 20), 32 << 20))

    flops = 2 * b_pad * sum(w.shape[0] * w.shape[1] for w in weights)
    bytes_accessed = (w_bytes + bias_pack.size * 4
                      + x.size * x.dtype.itemsize + b_pad * out_dim * 4)

    kernel = functools.partial(_mlp_kernel, act_dtype=act_dtype, out_dim=out_dim)
    out = pl.pallas_call(
        kernel,
        out_shape=jax.ShapeDtypeStruct((b_pad, out_dim), jnp.float32),
        grid=(n_tiles,),
        in_specs=[x_spec] + w_specs + [b_spec],
        out_specs=out_spec,
        compiler_params=pltpu.CompilerParams(
            dimension_semantics=("parallel",),
            vmem_limit_bytes=vmem_limit),
        cost_estimate=pl.CostEstimate(
            flops=flops, transcendentals=0, bytes_accessed=bytes_accessed),
    )(x, *weights, bias_pack)
    return out[:B] if b_pad != B else out


def mlp_reference(x, params, n_hidden):
    """Plain-JAX f32 reference matching the PyTorch module (eval mode)."""
    h = x.astype(jnp.float32)
    idx = 0
    for _ in range(n_hidden):
        w, b, g, bt, mu, var = params[idx:idx + 6]
        idx += 6
        h = h @ w + b
        h = (h - mu) * jax.lax.rsqrt(var + BN_EPS) * g + bt
        h = jnp.where(h >= 0.0, h, LEAKY_SLOPE * h)
    return h @ params[idx] + params[idx + 1]


if __name__ == "__main__":
    input_dim = 32
    hidden_dims = [512, 256, 128, 64]
    output_dim = 1

    key = jax.random.PRNGKey(0)
    key, kx1, kx2 = jax.random.split(key, 3)
    params = init_params(key, input_dim, hidden_dims, output_dim)
    weights, bias_pack, out_dim = fold_params(params, len(hidden_dims))

    # Small batch (single tile).
    x1 = jax.random.normal(kx1, (8, input_dim), dtype=jnp.float32)
    out1 = jax.block_until_ready(mlp_forward(x1, weights, bias_pack, out_dim))
    ref1 = mlp_reference(x1, params, len(hidden_dims))
    assert out1.shape == (8, output_dim), out1.shape
    assert jnp.allclose(out1, ref1, atol=5e-2, rtol=5e-2), (out1, ref1)

    # Ragged batch (exercises batch padding + >=2 grid steps / megacore path).
    x2 = jax.random.normal(kx2, (40, input_dim), dtype=jnp.float32)
    out2 = jax.block_until_ready(mlp_forward(x2, weights, bias_pack, out_dim))
    ref2 = mlp_reference(x2, params, len(hidden_dims))
    assert out2.shape == (40, output_dim), out2.shape
    assert jnp.allclose(out2, ref2, atol=5e-2, rtol=5e-2), (out2, ref2)

    print("KERNEL_OK")
</pallas_src>

<mosaic_0001>
module attributes {stable_mosaic.version = 11 : i64} {
  func.func @_mlp_kernel(%arg0: i32, %arg1: memref<16x32xbf16, #tpu.memory_space<vmem>>, %arg2: memref<32x512xbf16, #tpu.memory_space<vmem>>, %arg3: memref<512x256xbf16, #tpu.memory_space<vmem>>, %arg4: memref<256x128xbf16, #tpu.memory_space<vmem>>, %arg5: memref<128x128xbf16, #tpu.memory_space<vmem>>, %arg6: memref<128x128xbf16, #tpu.memory_space<vmem>>, %arg7: memref<5x512xf32, #tpu.memory_space<vmem>>, %arg8: memref<16x1xf32, #tpu.memory_space<vmem>>) attributes {dimension_semantics = [#tpu.dimension_semantics<parallel>], iteration_bounds = array<i64: 1>, scalar_prefetch = 0 : i64, scratch_operands = 0 : i64, tpu.core_type = #tpu.core_type<tc>, window_params = [{transform_indices = @transform_0, window_bounds = array<i64: 16, 32>}, {pipeline_mode = #tpu.pipeline_mode<synchronous>, transform_indices = @transform_1, window_bounds = array<i64: 32, 512>}, {pipeline_mode = #tpu.pipeline_mode<synchronous>, transform_indices = @transform_2, window_bounds = array<i64: 512, 256>}, {pipeline_mode = #tpu.pipeline_mode<synchronous>, transform_indices = @transform_3, window_bounds = array<i64: 256, 128>}, {pipeline_mode = #tpu.pipeline_mode<synchronous>, transform_indices = @transform_4, window_bounds = array<i64: 128, 128>}, {pipeline_mode = #tpu.pipeline_mode<synchronous>, transform_indices = @transform_5, window_bounds = array<i64: 128, 128>}, {pipeline_mode = #tpu.pipeline_mode<synchronous>, transform_indices = @transform_6, window_bounds = array<i64: 5, 512>}, {transform_indices = @transform_7, window_bounds = array<i64: 16, 1>}]} {
    %c0 = arith.constant 0 : index
    %c0_0 = arith.constant 0 : index
    %0 = vector.load %arg1[%c0, %c0_0] : memref<16x32xbf16, #tpu.memory_space<vmem>>, vector<16x32xbf16>
    %c0_1 = arith.constant 0 : index
    %c0_2 = arith.constant 0 : index
    %1 = vector.load %arg2[%c0_1, %c0_2] : memref<32x512xbf16, #tpu.memory_space<vmem>>, vector<32x512xbf16>
    %cst = arith.constant dense<0.000000e+00> : vector<16x512xf32>
    %2 = tpu.matmul %0, %1, %cst {dimension_numbers = #tpu.dot_dimension_numbers<[1], [0], [0], [1], [0, 0, 1, 1], [], []>} : vector<16x32xbf16>, vector<32x512xbf16>, vector<16x512xf32> -> vector<16x512xf32>
    %c0_3 = arith.constant 0 : index
    %c0_4 = arith.constant 0 : index
    %3 = vector.load %arg7[%c0_3, %c0_4] : memref<5x512xf32, #tpu.memory_space<vmem>>, vector<1x512xf32>
    %4 = vector.broadcast %3 : vector<1x512xf32> to vector<16x512xf32>
    %5 = arith.addf %2, %4 : vector<16x512xf32>
    %cst_5 = arith.constant 0.00999999977 : f32
    %6 = vector.broadcast %cst_5 : f32 to vector<16x512xf32>
    %7 = arith.mulf %6, %5 : vector<16x512xf32>
    %8 = arith.maximumf %5, %7 : vector<16x512xf32>
    %9 = arith.truncf %8 : vector<16x512xf32> to vector<16x512xbf16>
    %c0_6 = arith.constant 0 : index
    %c0_7 = arith.constant 0 : index
    %10 = vector.load %arg3[%c0_6, %c0_7] : memref<512x256xbf16, #tpu.memory_space<vmem>>, vector<512x256xbf16>
    %cst_8 = arith.constant dense<0.000000e+00> : vector<16x256xf32>
    %11 = tpu.matmul %9, %10, %cst_8 {dimension_numbers = #tpu.dot_dimension_numbers<[1], [0], [0], [1], [0, 0, 1, 1], [], []>} : vector<16x512xbf16>, vector<512x256xbf16>, vector<16x256xf32> -> vector<16x256xf32>
    %c1 = arith.constant 1 : index
    %c0_9 = arith.constant 0 : index
    %12 = vector.load %arg7[%c1, %c0_9] : memref<5x512xf32, #tpu.memory_space<vmem>>, vector<1x256xf32>
    %13 = vector.broadcast %12 : vector<1x256xf32> to vector<16x256xf32>
    %14 = arith.addf %11, %13 : vector<16x256xf32>
    %cst_10 = arith.constant 0.00999999977 : f32
    %15 = vector.broadcast %cst_10 : f32 to vector<16x256xf32>
    %16 = arith.mulf %15, %14 : vector<16x256xf32>
    %17 = arith.maximumf %14, %16 : vector<16x256xf32>
    %18 = arith.truncf %17 : vector<16x256xf32> to vector<16x256xbf16>
    %c0_11 = arith.constant 0 : index
    %c0_12 = arith.constant 0 : index
    %19 = vector.load %arg4[%c0_11, %c0_12] : memref<256x128xbf16, #tpu.memory_space<vmem>>, vector<256x128xbf16>
    %cst_13 = arith.constant dense<0.000000e+00> : vector<16x128xf32>
    %20 = tpu.matmul %18, %19, %cst_13 {dimension_numbers = #tpu.dot_dimension_numbers<[1], [0], [0], [1], [0, 0, 1, 1], [], []>} : vector<16x256xbf16>, vector<256x128xbf16>, vector<16x128xf32> -> vector<16x128xf32>
    %c2 = arith.constant 2 : index
    %c0_14 = arith.constant 0 : index
    %21 = vector.load %arg7[%c2, %c0_14] : memref<5x512xf32, #tpu.memory_space<vmem>>, vector<1x128xf32>
    %22 = vector.broadcast %21 : vector<1x128xf32> to vector<16x128xf32>
    %23 = arith.addf %20, %22 : vector<16x128xf32>
    %cst_15 = arith.constant 0.00999999977 : f32
    %24 = vector.broadcast %cst_15 : f32 to vector<16x128xf32>
    %25 = arith.mulf %24, %23 : vector<16x128xf32>
    %26 = arith.maximumf %23, %25 : vector<16x128xf32>
    %27 = arith.truncf %26 : vector<16x128xf32> to vector<16x128xbf16>
    %c0_16 = arith.constant 0 : index
    %c0_17 = arith.constant 0 : index
    %28 = vector.load %arg5[%c0_16, %c0_17] : memref<128x128xbf16, #tpu.memory_space<vmem>>, vector<128x128xbf16>
    %cst_18 = arith.constant dense<0.000000e+00> : vector<16x128xf32>
    %29 = tpu.matmul %27, %28, %cst_18 {dimension_numbers = #tpu.dot_dimension_numbers<[1], [0], [0], [1], [0, 0, 1, 1], [], []>} : vector<16x128xbf16>, vector<128x128xbf16>, vector<16x128xf32> -> vector<16x128xf32>
    %c3 = arith.constant 3 : index
    %c0_19 = arith.constant 0 : index
    %30 = vector.load %arg7[%c3, %c0_19] : memref<5x512xf32, #tpu.memory_space<vmem>>, vector<1x128xf32>
    %31 = vector.broadcast %30 : vector<1x128xf32> to vector<16x128xf32>
    %32 = arith.addf %29, %31 : vector<16x128xf32>
    %cst_20 = arith.constant 0.00999999977 : f32
    %33 = vector.broadcast %cst_20 : f32 to vector<16x128xf32>
    %34 = arith.mulf %33, %32 : vector<16x128xf32>
    %35 = arith.maximumf %32, %34 : vector<16x128xf32>
    %36 = arith.truncf %35 : vector<16x128xf32> to vector<16x128xbf16>
    %c0_21 = arith.constant 0 : index
    %c0_22 = arith.constant 0 : index
    %37 = vector.load %arg6[%c0_21, %c0_22] : memref<128x128xbf16, #tpu.memory_space<vmem>>, vector<128x128xbf16>
    %cst_23 = arith.constant dense<0.000000e+00> : vector<16x128xf32>
    %38 = tpu.matmul %36, %37, %cst_23 {dimension_numbers = #tpu.dot_dimension_numbers<[1], [0], [0], [1], [0, 0, 1, 1], [], []>} : vector<16x128xbf16>, vector<128x128xbf16>, vector<16x128xf32> -> vector<16x128xf32>
    %c4 = arith.constant 4 : index
    %c0_24 = arith.constant 0 : index
    %39 = vector.load %arg7[%c4, %c0_24] : memref<5x512xf32, #tpu.memory_space<vmem>>, vector<1x128xf32>
    %40 = vector.broadcast %39 : vector<1x128xf32> to vector<16x128xf32>
    %41 = arith.addf %38, %40 : vector<16x128xf32>
    %42 = vector.extract_strided_slice %41 {offsets = [0, 0], sizes = [16, 1], strides = [1, 1]} : vector<16x128xf32> to vector<16x1xf32>
    %c0_25 = arith.constant 0 : index
    %c0_26 = arith.constant 0 : index
    %43 = vector.load %arg8[%c0_25, %c0_26] : memref<16x1xf32, #tpu.memory_space<vmem>>, vector<16x1xf32>
    tpu.vector_store %arg8[%c0_25, %c0_26], %42 {strides = array<i32>} : memref<16x1xf32, #tpu.memory_space<vmem>>, vector<16x1xf32>,
    return
  }
  func.func @transform_0(%arg0: i32) -> (i32, i32) {
    %c0_i32 = arith.constant 0 : i32
    %c0_i32_0 = arith.constant 0 : i32
    return %arg0, %c0_i32 : i32, i32
  }
  func.func @transform_1(%arg0: i32) -> (i32, i32) {
    %c0_i32 = arith.constant 0 : i32
    %c0_i32_0 = arith.constant 0 : i32
    %c0_i32_1 = arith.constant 0 : i32
    return %c0_i32, %c0_i32_0 : i32, i32
  }
  func.func @transform_2(%arg0: i32) -> (i32, i32) {
    %c0_i32 = arith.constant 0 : i32
    %c0_i32_0 = arith.constant 0 : i32
    %c0_i32_1 = arith.constant 0 : i32
    return %c0_i32, %c0_i32_0 : i32, i32
  }
  func.func @transform_3(%arg0: i32) -> (i32, i32) {
    %c0_i32 = arith.constant 0 : i32
    %c0_i32_0 = arith.constant 0 : i32
    %c0_i32_1 = arith.constant 0 : i32
    return %c0_i32, %c0_i32_0 : i32, i32
  }
  func.func @transform_4(%arg0: i32) -> (i32, i32) {
    %c0_i32 = arith.constant 0 : i32
    %c0_i32_0 = arith.constant 0 : i32
    %c0_i32_1 = arith.constant 0 : i32
    return %c0_i32, %c0_i32_0 : i32, i32
  }
  func.func @transform_5(%arg0: i32) -> (i32, i32) {
    %c0_i32 = arith.constant 0 : i32
    %c0_i32_0 = arith.constant 0 : i32
    %c0_i32_1 = arith.constant 0 : i32
    return %c0_i32, %c0_i32_0 : i32, i32
  }
  func.func @transform_6(%arg0: i32) -> (i32, i32) {
    %c0_i32 = arith.constant 0 : i32
    %c0_i32_0 = arith.constant 0 : i32
    %c0_i32_1 = arith.constant 0 : i32
    return %c0_i32, %c0_i32_0 : i32, i32
  }
  func.func @transform_7(%arg0: i32) -> (i32, i32) {
    %c0_i32 = arith.constant 0 : i32
    %c0_i32_0 = arith.constant 0 : i32
    return %arg0, %c0_i32 : i32, i32
  }
}

</mosaic_0001>

<bundles_post_ra>
// kernel: tpu_custom_call.1
= control target key start
LH: loop header
LB: loop body
LE: loop exit
PB: predicated region body
PF: predicated region fallthrough
CT: control target
= control target key end

     0   :  { %12 = vsyncpa [#allocation3], 0  ;;  %s1942_s0 = inlined_call_operand.hbm [shape: bf16[16,32], index: 0, kind: input, shape index: {}]   ;;  %s1943_s1 = inlined_call_operand.hbm [shape: bf16[32,512], index: 1, kind: input, shape index: {}]   ;;  %s1944_s2 = inlined_call_operand.hbm [shape: bf16[512,256], index: 2, kind: input, shape index: {}]   ;;  %s1945_s3 = inlined_call_operand.hbm [shape: bf16[256,128], index: 3, kind: input, shape index: {}]   ;;  %s1946_s4 = inlined_call_operand.hbm [shape: bf16[128,128], index: 4, kind: input, shape index: {}]   ;;  %s1947_s5 = inlined_call_operand.hbm [shape: bf16[128,128], index: 5, kind: input, shape index: {}]   ;;  %s1948_s6 = inlined_call_operand.hbm [shape: f32[5,512], index: 6, kind: input, shape index: {}]   ;;  %s1949_s7 = inlined_call_operand.vmem [shape: f32[16,1], index: 7, kind: output, shape index: {}]  }
   0x1   :  { %13 = vsyncpa [#allocation5], 0 }
   0x2   :  { %14 = vsyncpa [#allocation8], 0  ;;  %s33_s26 = sshll.u32 %s1943_s1, 4  ;;  %s34_s26 = int_to_ptr.hbm [resolvable:$true] %s33_s26 }
   0x3   :  { %15 = vsyncpa [#allocation11], 0  ;;  %s1846_s27 = smov [#allocation4]   ;;  %s1847_s29 = smov 256  }
   0x4   :  { %s35_s28 = sshll.u32 %s1846_s27, 4  ;;  %s1848_s30 = smov 16   ;;  %s36_s28 = int_to_ptr.vmem [resolvable:$true] %s35_s28 }
   0x5   :  { %41 = dma.hbm_to_vmem [thread:$0]  %s34_s26, 1024, %s36_s28, [#allocation5], %s1847_s29, %s1847_s29, %s1848_s30  }
   0x6   :  { %s59_s10 = sshll.u32 %s1945_s3, 4  ;;  %s1849_s11 = smov [#allocation7]   ;;  %s60_s10 = int_to_ptr.hbm [resolvable:$true] %s59_s10 }
   0x7   :  { %s61_s12 = sshll.u32 %s1849_s11, 4  ;;  %s85_s15 = sshll.u32 %s1947_s5, 4  ;;  %s62_s12 = int_to_ptr.vmem [resolvable:$true] %s61_s12  ;;  %s86_s15 = int_to_ptr.hbm [resolvable:$true] %s85_s15 }
   0x8   :  { %s1850_s1 = smov 64   ;;  %s1851_s16 = smov 4  }
   0x9   :  { %67 = dma.hbm_to_vmem [thread:$0]  %s60_s10, 2048, %s62_s12, [#allocation8], %s1850_s1, %s1850_s1, %s1851_s16  }
   0xa   :  { %s20_s19 = sshll.u32 %s1942_s0, 4  ;;  %s1852_s3 = smov [#allocation10]   ;;  %s21_s19 = int_to_ptr.hbm [resolvable:$true] %s20_s19 }
   0xb   :  { %s87_s20 = sshll.u32 %s1852_s3, 4  ;;  %s1853_s5 = smov [#allocation2]   ;;  %s88_s20 = int_to_ptr.vmem [resolvable:$true] %s87_s20 }
   0xc   :  { %93 = dma.hbm_to_vmem [thread:$0]  %s86_s15, 1024, %s88_s20, [#allocation11], %s1850_s1, %s1850_s1, %s1851_s16  }
   0xd   :  { %s22_s21 = sshll.u32 %s1853_s5, 4  ;;  %s46_s24 = sshll.u32 %s1944_s2, 4  ;;  %s23_s21 = int_to_ptr.vmem [resolvable:$true] %s22_s21  ;;  %s47_s24 = int_to_ptr.hbm [resolvable:$true] %s46_s24 }
   0xe   :  { %28 = dma.hbm_to_vmem [thread:$0]  %s21_s19, 128, %s23_s21, [#allocation3], %s1850_s1, %s1850_s1, %s1851_s16  }
   0xf   :  { %s1854_s0 = smov [#allocation6]   ;;  %s72_s28 = sshll.u32 %s1946_s4, 4  ;;  %s73_s28 = int_to_ptr.hbm [resolvable:$true] %s72_s28 }
  0x10   :  { %s48_s25 = sshll.u32 %s1854_s0, 4  ;;  %s1855_s29 = smov 128   ;;  %s49_s25 = int_to_ptr.vmem [resolvable:$true] %s48_s25 }
  0x11   :  { %s1856_s30 = smov 8   ;;  %s1857_s8 = smov [#allocation9]  }
  0x12   :  { %54 = dma.hbm_to_vmem [thread:$0]  %s47_s24, 8192, %s49_s25, [#allocation5], %s1855_s29, %s1855_s29, %s1856_s30  }
  0x13   :  { %s74_s9 = sshll.u32 %s1857_s8, 4  ;;  %s99_s11 = sshll.u32 %s1948_s6, 4  ;;  %s75_s9 = int_to_ptr.vmem [resolvable:$true] %s74_s9  ;;  %s100_s11 = int_to_ptr.hbm [resolvable:$true] %s99_s11 }
  0x14   :  { %80 = dma.hbm_to_vmem [thread:$0]  %s73_s28, 1024, %s75_s9, [#allocation8], %s1850_s1, %s1850_s1, %s1851_s16  }
  0x15   :  { %s1858_s12 = smov [#allocation12]  }
  0x16   :  { %s101_s13 = sshll.u32 %s1858_s12, 4  ;;  %s102_s13 = int_to_ptr.vmem [resolvable:$true] %s101_s13 }
  0x17   :  { %104 = dma.hbm_to_vmem [thread:$0]  %s100_s11, 512, %s102_s13, [#allocation11]  }
  0x18   :  { %1838 = dma.done.wait [#allocation3], 128  }
  0x19   :  { %1839 = vsyncadd [#allocation3], 4294967168 }
  0x1a   :  { %1840 = dma.done.wait [#allocation5], 9216  }
  0x1b   :  { %1841 = vsyncadd [#allocation5], 4294958080 }
  0x1c   :  { %1842 = dma.done.wait [#allocation8], 3072  }
  0x1d   :  { %1843 = vsyncadd [#allocation8], 4294964224 }
  0x1e   :  { %1844 = dma.done.wait [#allocation11], 1536  }
  0x1f   :  { %1845 = vsyncadd [#allocation11], 4294965760  ;;  %v1150_v0 = vld [vmem:[#allocation4 + $0x20] sm:$0xf]  ;;  %v1559_v1 = vld [vmem:[#allocation4 + $0x2c] sm:$0xf0] }
  0x20   :  { %v1557_v2 = vld [vmem:[#allocation4 + $0x24] sm:$0xf]  ;;  %v1151_v3 = vor.u32 %v1559_v1, %v1150_v0  ;;  %v1152_v4 = vld [vmem:[#allocation4 + $0x30] sm:$0xf0]  ;;  %v1158_v5 = vld [vmem:[#allocation4 + $0x28] sm:$0xf] }
  0x21   :  { %v1560_v6 = vld [vmem:[#allocation4 + $0x34] sm:$0xf0]  ;;  %v1155_v7 = vor.u32 %v1557_v2, %v1152_v4  ;;  %v1558_v9 = vld [vmem:[#allocation4 + $0x2c] sm:$0xf]  ;;  %v1160_v10 = vld [vmem:[#allocation4 + $0x38] sm:$0xf0] }
  0x22   :  { %v1159_v8 = vor.u32 %v1560_v6, %v1158_v5  ;;  %v1134_v11 = vld [vmem:[#allocation4] sm:$0xf]  ;;  %209 = vmatpush.bf16.msra.mxu0 %v1151_v3  ;;  %v1163_v12 = vor.u32 %v1558_v9, %v1160_v10  ;;  %v1555_v13 = vld [vmem:[#allocation4 + $0xc] sm:$0xf0]  ;;  %v1553_v14 = vld [vmem:[#allocation4 + $0x4] sm:$0xf] }
  0x23   :  { %v1136_v15 = vld [vmem:[#allocation4 + $0x10] sm:$0xf0]  ;;  %223 = vmatpush.bf16.msra.mxu1 %v1155_v7  ;;  %v1135_v16 = vor.u32 %v1555_v13, %v1134_v11  ;;  %v1142_v18 = vld [vmem:[#allocation4 + $0x8] sm:$0xf]  ;;  %v1556_v19 = vld [vmem:[#allocation4 + $0x14] sm:$0xf0] }
  0x24   :  { %237 = vmatpush.bf16.msra.mxu2 %v1159_v8  ;;  %v1139_v17 = vor.u32 %v1553_v14, %v1136_v15  ;;  %v1554_v20 = vld [vmem:[#allocation4 + $0xc] sm:$0xf]  ;;  %251 = vmatpush.bf16.msra.mxu3 %v1163_v12  ;;  %v1143_v21 = vor.u32 %v1556_v19, %v1142_v18  ;;  %v1144_v22 = vld [vmem:[#allocation4 + $0x18] sm:$0xf0]  ;;  %vm199_vm0 = vcmask 261120   ;;  %vm1117_vm1 = vcmask 7168  }
  0x25   :  { %v1552_v23 = vld [vmem:[#allocation2] sm:$0xff]  ;;  %v1226_v24 = vld [vmem:[#allocation6 + $0x70] sm:$0xf]  ;;  %v1147_v25 = vor.u32 %v1554_v20, %v1144_v22  ;;  %v1218_v31 = vld [vmem:[#allocation6 + $0x60] sm:$0xf] }
  0x26   :  { %v1576_v26 = vld [vmem:[#allocation6 + $0x74] sm:$0xf0]  ;;  %v1290_v27 = vld [vmem:[#allocation6 + $0xf0] sm:$0xf]  ;;  %210 = vmatpush.bf16.msra.mxu0 %v1135_v16  ;;  %v1574_v32 = vld [vmem:[#allocation6 + $0x64] sm:$0xf0] }
  0x27   :  { %v1592_v28 = vld [vmem:[#allocation6 + $0xf4] sm:$0xf0]  ;;  %v1227_v29 = vor.u32 %v1576_v26, %v1226_v24  ;;  %v1282_v33 = vld [vmem:[#allocation6 + $0xe0] sm:$0xf]  ;;  %224 = vmatpush.bf16.msra.mxu1 %v1139_v17  ;;  %v1590_v34 = vld [vmem:[#allocation6 + $0xe4] sm:$0xf0]  ;;  %v1219_v37 = vor.u32 %v1574_v32, %v1218_v31 }
  0x28   :  { %v1291_v30 = vor.u32 %v1592_v28, %v1290_v27  ;;  %238 = vmatpush.bf16.msra.mxu2 %v1143_v21  ;;  %v1354_v35 = vld [vmem:[#allocation6 + $0x170] sm:$0xf]  ;;  %v1608_v36 = vld [vmem:[#allocation6 + $0x174] sm:$0xf0]  ;;  %252 = vmatpush.bf16.msra.mxu3 %v1147_v25  ;;  %v1283_v42 = vor.u32 %v1590_v34, %v1282_v33  ;;  %v1346_v47 = vld [vmem:[#allocation6 + $0x160] sm:$0xf] }
  0x29   :  { %v1355_v38 = vor.u32 %v1608_v36, %v1354_v35  ;;  %v1418_v39 = vld [vmem:[#allocation6 + $0x1f0] sm:$0xf]  ;;  %v1624_v40 = vld [vmem:[#allocation6 + $0x1f4] sm:$0xf0]  ;;  %1164 = vmatmul.msk.bf16.vlgmr.msra.gmra.mxu0 %vm199_vm0, %v1552_v23  ;;  %v1606_v48 = vld [vmem:[#allocation6 + $0x164] sm:$0xf0] }
  0x2a   :  { %670 = vmatpush.bf16.msrb.mxu0 %v1227_v29  ;;  %v1210_v41 = vld [vmem:[#allocation6 + $0x50] sm:$0xf]  ;;  %v1419_v43 = vor.u32 %v1624_v40, %v1418_v39  ;;  %v1572_v44 = vld [vmem:[#allocation6 + $0x54] sm:$0xf0]  ;;  %1165 = vmatmul.msk.bf16.vlgmr.msra.gmra.mxu1 %vm199_vm0, %v1552_v23  ;;  %v1410_v49 = vld [vmem:[#allocation6 + $0x1e0] sm:$0xf]  ;;  %v1347_v50 = vor.u32 %v1606_v48, %v1346_v47 }
  0x2b   :  { %684 = vmatpush.bf16.msrb.mxu1 %v1291_v30  ;;  %v1274_v45 = vld [vmem:[#allocation6 + $0xd0] sm:$0xf]  ;;  %v1588_v46 = vld [vmem:[#allocation6 + $0xd4] sm:$0xf0]  ;;  %1166 = vmatmul.msk.bf16.vlgmr.msra.gmra.mxu2 %vm199_vm0, %v1552_v23  ;;  %v1622_v51 = vld [vmem:[#allocation6 + $0x1e4] sm:$0xf0]  ;;  %v1211_v52 = vor.u32 %v1572_v44, %v1210_v41 }
  0x2c   :  { %1167 = vmatmul.msk.bf16.vlgmr.msra.gmra.mxu3 %vm199_vm0, %v1552_v23  ;;  %698 = vmatpush.bf16.msrb.mxu2 %v1355_v38  ;;  %v1411_v53 = vor.u32 %v1622_v51, %v1410_v49  ;;  %v1202_v54 = vld [vmem:[#allocation6 + $0x40] sm:$0xf]  ;;  %v1570_v55 = vld [vmem:[#allocation6 + $0x44] sm:$0xf0]  ;;  %v1338_v56 = vld [vmem:[#allocation6 + $0x150] sm:$0xf]  ;;  %v1275_v57 = vor.u32 %v1588_v46, %v1274_v45 }
  0x2d   :  { %712 = vmatpush.bf16.msrb.mxu3 %v1419_v43  ;;  %v1604_v58 = vld [vmem:[#allocation6 + $0x154] sm:$0xf0]  ;;  %v1402_v59 = vld [vmem:[#allocation6 + $0x1d0] sm:$0xf]  ;;  %v1266_v61 = vld [vmem:[#allocation6 + $0xc0] sm:$0xf]  ;;  %v1203_v0 = vor.u32 %v1570_v55, %v1202_v54 }
  0x2e   :  { %671 = vmatpush.bf16.msrb.mxu0 %v1219_v37  ;;  %v1620_v60 = vld [vmem:[#allocation6 + $0x1d4] sm:$0xf0]  ;;  %v1586_v62 = vld [vmem:[#allocation6 + $0xc4] sm:$0xf0]  ;;  %v1339_v63 = vor.u32 %v1604_v58, %v1338_v56  ;;  %v1194_v2 = vld [vmem:[#allocation6 + $0x30] sm:$0xf] }
  0x2f   :  { %685 = vmatpush.bf16.msrb.mxu1 %v1283_v42  ;;  %v1403_v1 = vor.u32 %v1620_v60, %v1402_v59  ;;  %v1330_v3 = vld [vmem:[#allocation6 + $0x140] sm:$0xf]  ;;  %v1602_v4 = vld [vmem:[#allocation6 + $0x144] sm:$0xf0]  ;;  %v1267_v5 = vor.u32 %v1586_v62, %v1266_v61  ;;  %v1568_v6 = vld [vmem:[#allocation6 + $0x34] sm:$0xf0] }
  0x30   :  { %699 = vmatpush.bf16.msrb.mxu2 %v1347_v50  ;;  %v1394_v7 = vld [vmem:[#allocation6 + $0x1c0] sm:$0xf]  ;;  %v1618_v8 = vld [vmem:[#allocation6 + $0x1c4] sm:$0xf0]  ;;  %v1258_v9 = vld [vmem:[#allocation6 + $0xb0] sm:$0xf]  ;;  %v1331_v11 = vor.u32 %v1602_v4, %v1330_v3  ;;  %v1195_v12 = vor.u32 %v1568_v6, %v1194_v2 }
  0x31   :  { %713 = vmatpush.bf16.msrb.mxu3 %v1411_v53  ;;  %v1584_v10 = vld [vmem:[#allocation6 + $0xb4] sm:$0xf0]  ;;  %v1395_v13 = vor.u32 %v1618_v8, %v1394_v7  ;;  %v1186_v14 = vld [vmem:[#allocation6 + $0x20] sm:$0xf]  ;;  %v1322_v15 = vld [vmem:[#allocation6 + $0x130] sm:$0xf] }
  0x32   :  { %672 = vmatpush.bf16.msrb.mxu0 %v1211_v52  ;;  %v1600_v16 = vld [vmem:[#allocation6 + $0x134] sm:$0xf0]  ;;  %v1259_v17 = vor.u32 %v1584_v10, %v1258_v9  ;;  %v1566_v18 = vld [vmem:[#allocation6 + $0x24] sm:$0xf0]  ;;  %v1386_v19 = vld [vmem:[#allocation6 + $0x1b0] sm:$0xf] }
  0x33   :  { %686 = vmatpush.bf16.msrb.mxu1 %v1275_v57  ;;  %v1616_v20 = vld [vmem:[#allocation6 + $0x1b4] sm:$0xf0]  ;;  %v1250_v21 = vld [vmem:[#allocation6 + $0xa0] sm:$0xf]  ;;  %v1582_v22 = vld [vmem:[#allocation6 + $0xa4] sm:$0xf0]  ;;  %v1323_v23 = vor.u32 %v1600_v16, %v1322_v15  ;;  %v1187_v24 = vor.u32 %v1566_v18, %v1186_v14 }
  0x34   :  { %700 = vmatpush.bf16.msrb.mxu2 %v1339_v63  ;;  %v1387_v25 = vor.u32 %v1616_v20, %v1386_v19  ;;  %v1178_v26 = vld [vmem:[#allocation6 + $0x10] sm:$0xf]  ;;  %v1314_v27 = vld [vmem:[#allocation6 + $0x120] sm:$0xf]  ;;  %v1598_v28 = vld [vmem:[#allocation6 + $0x124] sm:$0xf0]  ;;  %v1251_v29 = vor.u32 %v1582_v22, %v1250_v21 }
  0x35   :  { %714 = vmatpush.bf16.msrb.mxu3 %v1403_v1  ;;  %v1564_v30 = vld [vmem:[#allocation6 + $0x14] sm:$0xf0]  ;;  %v1378_v31 = vld [vmem:[#allocation6 + $0x1a0] sm:$0xf]  ;;  %v1614_v32 = vld [vmem:[#allocation6 + $0x1a4] sm:$0xf0]  ;;  %v1315_v35 = vor.u32 %v1598_v28, %v1314_v27 }
  0x36   :  { %673 = vmatpush.bf16.msrb.mxu0 %v1203_v0  ;;  %v1242_v33 = vld [vmem:[#allocation6 + $0x90] sm:$0xf]  ;;  %v1580_v34 = vld [vmem:[#allocation6 + $0x94] sm:$0xf0]  ;;  %v1179_v36 = vor.u32 %v1564_v30, %v1178_v26  ;;  %v1379_v37 = vor.u32 %v1614_v32, %v1378_v31  ;;  %v1170_v39 = vld [vmem:[#allocation6] sm:$0xf] }
  0x37   :  { %687 = vmatpush.bf16.msrb.mxu1 %v1267_v5  ;;  %v1243_v38 = vor.u32 %v1580_v34, %v1242_v33  ;;  %v1562_v40 = vld [vmem:[#allocation6 + $0x4] sm:$0xf0]  ;;  %v1234_v41 = vld [vmem:[#allocation6 + $0x80] sm:$0xf]  ;;  %v1575_v44 = vld [vmem:[#allocation6 + $0x74] sm:$0xf] }
  0x38   :  { %701 = vmatpush.bf16.msrb.mxu2 %v1331_v11  ;;  %v1171_v42 = vor.u32 %v1562_v40, %v1170_v39  ;;  %v1578_v43 = vld [vmem:[#allocation6 + $0x84] sm:$0xf0]  ;;  %v1228_v45 = vld [vmem:[#allocation6 + $0x78] sm:$0xf0]  ;;  %v1591_v48 = vld [vmem:[#allocation6 + $0xf4] sm:$0xf] }
  0x39   :  { %715 = vmatpush.bf16.msrb.mxu3 %v1395_v13  ;;  %v1235_v46 = vor.u32 %v1578_v43, %v1234_v41  ;;  %v1231_v47 = vor.u32 %v1575_v44, %v1228_v45  ;;  %v1292_v49 = vld [vmem:[#allocation6 + $0xf8] sm:$0xf0]  ;;  %v1306_v50 = vld [vmem:[#allocation6 + $0x110] sm:$0xf]  ;;  %v1596_v52 = vld [vmem:[#allocation6 + $0x114] sm:$0xf0] }
  0x3a   :  { %674 = vmatpush.bf16.msrb.mxu0 %v1195_v12  ;;  %v1295_v51 = vor.u32 %v1591_v48, %v1292_v49  ;;  %v1370_v53 = vld [vmem:[#allocation6 + $0x190] sm:$0xf]  ;;  %v1612_v54 = vld [vmem:[#allocation6 + $0x194] sm:$0xf0]  ;;  %v1307_v55 = vor.u32 %v1596_v52, %v1306_v50  ;;  %v1573_v57 = vld [vmem:[#allocation6 + $0x64] sm:$0xf] }
  0x3b   :  { %688 = vmatpush.bf16.msrb.mxu1 %v1259_v17  ;;  %v1371_v56 = vor.u32 %v1612_v54, %v1370_v53  ;;  %v1220_v58 = vld [vmem:[#allocation6 + $0x68] sm:$0xf0]  ;;  %v1589_v60 = vld [vmem:[#allocation6 + $0xe4] sm:$0xf]  ;;  %v1298_v63 = vld [vmem:[#allocation6 + $0x100] sm:$0xf] }
  0x3c   :  { %702 = vmatpush.bf16.msrb.mxu2 %v1323_v23  ;;  %v1223_v59 = vor.u32 %v1573_v57, %v1220_v58  ;;  %v1284_v61 = vld [vmem:[#allocation6 + $0xe8] sm:$0xf0]  ;;  %v1594_v0 = vld [vmem:[#allocation6 + $0x104] sm:$0xf0]  ;;  %v1362_v2 = vld [vmem:[#allocation6 + $0x180] sm:$0xf] }
  0x3d   :  { %716 = vmatpush.bf16.msrb.mxu3 %v1387_v25  ;;  %v1287_v62 = vor.u32 %v1589_v60, %v1284_v61  ;;  %v1299_v1 = vor.u32 %v1594_v0, %v1298_v63  ;;  %v1610_v3 = vld [vmem:[#allocation6 + $0x184] sm:$0xf0]  ;;  %v1607_v4 = vld [vmem:[#allocation6 + $0x174] sm:$0xf]  ;;  %v1356_v6 = vld [vmem:[#allocation6 + $0x178] sm:$0xf0] }
  0x3e   :  { %675 = vmatpush.bf16.msrb.mxu0 %v1187_v24  ;;  %v1363_v5 = vor.u32 %v1610_v3, %v1362_v2  ;;  %v1623_v7 = vld [vmem:[#allocation6 + $0x1f4] sm:$0xf]  ;;  %v1420_v8 = vld [vmem:[#allocation6 + $0x1f8] sm:$0xf0]  ;;  %v1359_v9 = vor.u32 %v1607_v4, %v1356_v6  ;;  %v1605_v16 = vld [vmem:[#allocation6 + $0x164] sm:$0xf] }
  0x3f   :  { %689 = vmatpush.bf16.msrb.mxu1 %v1251_v29  ;;  %v1423_v10 = vor.u32 %v1623_v7, %v1420_v8  ;;  %v1571_v11 = vld [vmem:[#allocation6 + $0x54] sm:$0xf]  ;;  %v1212_v12 = vld [vmem:[#allocation6 + $0x58] sm:$0xf0]  ;;  %v1348_v17 = vld [vmem:[#allocation6 + $0x168] sm:$0xf0] }
  0x40   :  { %703 = vmatpush.bf16.msrb.mxu2 %v1315_v35  ;;  %v1587_v13 = vld [vmem:[#allocation6 + $0xd4] sm:$0xf]  ;;  %v1215_v14 = vor.u32 %v1571_v11, %v1212_v12  ;;  %v1276_v15 = vld [vmem:[#allocation6 + $0xd8] sm:$0xf0]  ;;  %v1351_v19 = vor.u32 %v1605_v16, %v1348_v17  ;;  %v1621_v20 = vld [vmem:[#allocation6 + $0x1e4] sm:$0xf] }
  0x41   :  { %717 = vmatpush.bf16.msrb.mxu3 %v1379_v37  ;;  %v1279_v18 = vor.u32 %v1587_v13, %v1276_v15  ;;  %v1412_v21 = vld [vmem:[#allocation6 + $0x1e8] sm:$0xf0]  ;;  %v1569_v23 = vld [vmem:[#allocation6 + $0x44] sm:$0xf]  ;;  %v1603_v29 = vld [vmem:[#allocation6 + $0x154] sm:$0xf] }
  0x42   :  { %676 = vmatpush.bf16.msrb.mxu0 %v1179_v36  ;;  %v1415_v22 = vor.u32 %v1621_v20, %v1412_v21  ;;  %v1204_v24 = vld [vmem:[#allocation6 + $0x48] sm:$0xf0]  ;;  %v1585_v25 = vld [vmem:[#allocation6 + $0xc4] sm:$0xf]  ;;  %v1340_v30 = vld [vmem:[#allocation6 + $0x158] sm:$0xf0] }
  0x43   :  { %690 = vmatpush.bf16.msrb.mxu1 %v1243_v38  ;;  %v1207_v26 = vor.u32 %v1569_v23, %v1204_v24  ;;  %v1268_v27 = vld [vmem:[#allocation6 + $0xc8] sm:$0xf0]  ;;  %v1619_v31 = vld [vmem:[#allocation6 + $0x1d4] sm:$0xf]  ;;  %v1343_v32 = vor.u32 %v1603_v29, %v1340_v30  ;;  %v1404_v33 = vld [vmem:[#allocation6 + $0x1d8] sm:$0xf0] }
  0x44   :  { %704 = vmatpush.bf16.msrb.mxu2 %v1307_v55  ;;  %v1271_v28 = vor.u32 %v1585_v25, %v1268_v27  ;;  %v1407_v34 = vor.u32 %v1619_v31, %v1404_v33  ;;  %v1567_v35 = vld [vmem:[#allocation6 + $0x34] sm:$0xf]  ;;  %v1196_v36 = vld [vmem:[#allocation6 + $0x38] sm:$0xf0]  ;;  %v1601_v41 = vld [vmem:[#allocation6 + $0x144] sm:$0xf] }
  0x45   :  { %718 = vmatpush.bf16.msrb.mxu3 %v1371_v56  ;;  %v1583_v37 = vld [vmem:[#allocation6 + $0xb4] sm:$0xf]  ;;  %v1199_v38 = vor.u32 %v1567_v35, %v1196_v36  ;;  %v1260_v39 = vld [vmem:[#allocation6 + $0xb8] sm:$0xf0]  ;;  %v1617_v43 = vld [vmem:[#allocation6 + $0x1c4] sm:$0xf] }
  0x46   :  { %677 = vmatpush.bf16.msrb.mxu0 %v1171_v42  ;;  %v1263_v40 = vor.u32 %v1583_v37, %v1260_v39  ;;  %v1332_v42 = vld [vmem:[#allocation6 + $0x148] sm:$0xf0]  ;;  %v1581_v49 = vld [vmem:[#allocation6 + $0xa4] sm:$0xf]  ;;  %v1599_v53 = vld [vmem:[#allocation6 + $0x134] sm:$0xf] }
  0x47   :  { %691 = vmatpush.bf16.msrb.mxu1 %v1235_v46  ;;  %v1335_v44 = vor.u32 %v1601_v41, %v1332_v42  ;;  %v1396_v45 = vld [vmem:[#allocation6 + $0x1c8] sm:$0xf0]  ;;  %v1324_v54 = vld [vmem:[#allocation6 + $0x138] sm:$0xf0]  ;;  %v1615_v55 = vld [vmem:[#allocation6 + $0x1b4] sm:$0xf] }
  0x48   :  { %705 = vmatpush.bf16.msrb.mxu2 %v1299_v1  ;;  %v1399_v46 = vor.u32 %v1617_v43, %v1396_v45  ;;  %v1188_v48 = vld [vmem:[#allocation6 + $0x28] sm:$0xf0]  ;;  %v1327_v56 = vor.u32 %v1599_v53, %v1324_v54  ;;  %v1388_v57 = vld [vmem:[#allocation6 + $0x1b8] sm:$0xf0]  ;;  %v1579_v61 = vld [vmem:[#allocation6 + $0x94] sm:$0xf] }
  0x49   :  { %719 = vmatpush.bf16.msrb.mxu3 %v1363_v5  ;;  %v1391_v58 = vor.u32 %v1615_v55, %v1388_v57  ;;  %v1180_v60 = vld [vmem:[#allocation6 + $0x18] sm:$0xf0]  ;;  %v1597_v0 = vld [vmem:[#allocation6 + $0x124] sm:$0xf]  ;;  %v1316_v1 = vld [vmem:[#allocation6 + $0x128] sm:$0xf0] }
  0x4a   :  { %726 = vmatpush.bf16.msra.mxu0 %v1231_v47  ;;  %v1565_v47 = vld [vmem:[#allocation6 + $0x24] sm:$0xf]  ;;  %v1244_v63 = vld [vmem:[#allocation6 + $0x98] sm:$0xf0]  ;;  %v1380_v4 = vld [vmem:[#allocation6 + $0x1a8] sm:$0xf0]  ;;  %v1319_v6 = vor.u32 %v1597_v0, %v1316_v1 }
  0x4b   :  { %740 = vmatpush.bf16.msra.mxu1 %v1295_v51  ;;  %v1191_v50 = vor.u32 %v1565_v47, %v1188_v48  ;;  %v1252_v51 = vld [vmem:[#allocation6 + $0xa8] sm:$0xf0]  ;;  %v1247_v2 = vor.u32 %v1579_v61, %v1244_v63  ;;  %v1613_v3 = vld [vmem:[#allocation6 + $0x1a4] sm:$0xf]  ;;  %v1595_v12 = vld [vmem:[#allocation6 + $0x114] sm:$0xf] }
  0x4c   :  { %754 = vmatpush.bf16.msra.mxu2 %v1359_v9  ;;  %v1255_v52 = vor.u32 %v1581_v49, %v1252_v51  ;;  %v1561_v5 = vld [vmem:[#allocation6 + $0x4] sm:$0xf]  ;;  %v1383_v7 = vor.u32 %v1613_v3, %v1380_v4  ;;  %v1172_v8 = vld [vmem:[#allocation6 + $0x8] sm:$0xf0]  ;;  %v1308_v13 = vld [vmem:[#allocation6 + $0x118] sm:$0xf0] }
  0x4d   :  { %768 = vmatpush.bf16.msra.mxu3 %v1423_v10  ;;  %v1577_v9 = vld [vmem:[#allocation6 + $0x84] sm:$0xf]  ;;  %v1236_v10 = vld [vmem:[#allocation6 + $0x88] sm:$0xf0]  ;;  %v1175_v11 = vor.u32 %v1561_v5, %v1172_v8  ;;  %v1372_v17 = vld [vmem:[#allocation6 + $0x198] sm:$0xf0]  ;;  %v1311_v20 = vor.u32 %v1595_v12, %v1308_v13 }
  0x4e   :  { %727 = vmatpush.bf16.msra.mxu0 %v1223_v59  ;;  %v1563_v59 = vld [vmem:[#allocation6 + $0x14] sm:$0xf]  ;;  %v144_v15 = vld [vmem:[#allocation12] ss:$8 sm:$0xf]  ;;  %v1239_v16 = vor.u32 %v1577_v9, %v1236_v10 }
  0x4f   :  { %741 = vmatpush.bf16.msra.mxu1 %v1287_v62  ;;  %v1183_v62 = vor.u32 %v1563_v59, %v1180_v60  ;;  %v1593_v24 = vld [vmem:[#allocation6 + $0x104] sm:$0xf]  ;;  %v1300_v25 = vld [vmem:[#allocation6 + $0x108] sm:$0xf0]  ;;  %v1631_v3 = vld [vmem:[#allocation7 + $0x30] sm:$0xff] }
  0x50   :  { %755 = vmatpush.bf16.msra.mxu2 %v1351_v19  ;;  %v147_v19 = vperm.slane %v144_v15, 1  ;;  %v1364_v27 = vld [vmem:[#allocation6 + $0x188] sm:$0xf0]  ;;  %v1303_v29 = vor.u32 %v1593_v24, %v1300_v25  ;;  %v1629_v5 = vld [vmem:[#allocation7 + $0x20] sm:$0xff]  ;;  %v1627_v8 = vld [vmem:[#allocation7 + $0x10] sm:$0xff] }
  0x51   :  { %769 = vmatpush.bf16.msra.mxu3 %v1415_v22  ;;  %v146_v22 = vperm.slane %v144_v15, 0  ;;  %v1630_v4 = vld [vmem:[#allocation7 + $0x28] sm:$0xff]  ;;  %v1639_v9 = vld [vmem:[#allocation7 + $0x70] sm:$0xff]  ;;  %v1625_v12 = vld [vmem:[#allocation7] sm:$0xff] }
  0x52   :  { %728 = vmatpush.bf16.msra.mxu0 %v1215_v14  ;;  %v1611_v14 = vld [vmem:[#allocation6 + $0x194] sm:$0xf]  ;;  %v1626_v10 = vld [vmem:[#allocation7 + $0x8] sm:$0xff]  ;;  %v1637_v13 = vld [vmem:[#allocation7 + $0x60] sm:$0xff] }
  0x53   :  { %742 = vmatpush.bf16.msra.mxu1 %v1279_v18  ;;  %v1375_v21 = vor.u32 %v1611_v14, %v1372_v17  ;;  %v1635_v17 = vld [vmem:[#allocation7 + $0x50] sm:$0xff] }
  0x54   :  { %756 = vmatpush.bf16.msra.mxu2 %v1343_v32 }
  0x55   :  { %770 = vmatpush.bf16.msra.mxu3 %v1407_v34  ;;  %v148_v34 = vperm.slane %v144_v15, 2 }
  0x56   :  { %729 = vmatpush.bf16.msra.mxu0 %v1207_v26  ;;  %v1609_v26 = vld [vmem:[#allocation6 + $0x184] sm:$0xf] }
  0x57   :  { %743 = vmatpush.bf16.msra.mxu1 %v1271_v28  ;;  %v1367_v30 = vor.u32 %v1609_v26, %v1364_v27 }
  0x58   :  { %757 = vmatpush.bf16.msra.mxu2 %v1335_v44 }
  0x59   :  { %771 = vmatpush.bf16.msra.mxu3 %v1399_v46 }
  0x5a   :  { %730 = vmatpush.bf16.msra.mxu0 %v1199_v38  ;;  %v149_v38 = vperm.slane %v144_v15, 3  ;;  %v1636_v15 = vld [vmem:[#allocation7 + $0x58] sm:$0xff] }
  0x5b   :  { %744 = vmatpush.bf16.msra.mxu1 %v1263_v40 }
  0x5c   :  { %758 = vmatpush.bf16.msra.mxu2 %v1327_v56 }
  0x5d   :  { %772 = vmatpush.bf16.msra.mxu3 %v1391_v58 }
  0x5e   :  { %731 = vmatpush.bf16.msra.mxu0 %v1191_v50 }
  0x5f   :  { %745 = vmatpush.bf16.msra.mxu1 %v1255_v52 }
  0x60   :  { %759 = vmatpush.bf16.msra.mxu2 %v1319_v6  ;;  %v1628_v6 = vld [vmem:[#allocation7 + $0x18] sm:$0xff] }
  0x61   :  { %773 = vmatpush.bf16.msra.mxu3 %v1383_v7  ;;  %v1640_v7 = vld [vmem:[#allocation7 + $0x78] sm:$0xff] }
  0x62   :  { %732 = vmatpush.bf16.msra.mxu0 %v1183_v62 }
  0x63   :  { %746 = vmatpush.bf16.msra.mxu1 %v1247_v2  ;;  %v1632_v2 = vld [vmem:[#allocation7 + $0x38] sm:$0xff] }
  0x64   :  { %760 = vmatpush.bf16.msra.mxu2 %v1311_v20  ;;  %v1634_v20 = vld [vmem:[#allocation7 + $0x48] sm:$0xff] }
  0x65   :  { %774 = vmatpush.bf16.msra.mxu3 %v1375_v21 }
  0x66   :  { %733 = vmatpush.bf16.msra.mxu0 %v1175_v11  ;;  %v1638_v11 = vld [vmem:[#allocation7 + $0x68] sm:$0xff] }
  0x67   :  { %747 = vmatpush.bf16.msra.mxu1 %v1239_v16  ;;  %v344_v16 = vld [vmem:[#allocation12 + $0x1] ss:$8 sm:$0x3] }
  0x68   :  { %761 = vmatpush.bf16.msra.mxu2 %v1303_v29 }
  0x69   :  { %775 = vmatpush.bf16.msra.mxu3 %v1367_v30 }
  0xa6   :  { %v212_v18 = vpop.f32.mrf.mxu0 }
  0xa7   :  { %v226_v23 = vpop.f32.mrf.mxu1  ;;  %v213_v31 = vadd.f32 %v212_v18, %v146_v22 }
  0xa8   :  { %v227_v28 = vadd.f32 %v226_v23, %v147_v19  ;;  %v1633_v23 = vld [vmem:[#allocation7 + $0x40] sm:$0xff] }
  0xa9   :  { %v259_v37 = vmul.f32 0.01, %v213_v31 }
  0xaa   :  { %v260_v33 = vmul.f32 0.01, %v227_v28 }
  0xab   :  { %v267_v46 = vmax.f32 %v213_v31, %v259_v37 }
  0xac   :  { %v268_v43 = vmax.f32 %v227_v28, %v260_v33 }
  0xae   :  { %v240_v32 = vpop.f32.mrf.mxu2  ;;  %v214_v36 = vpop.f32.mrf.mxu0 }
  0xaf   :  { %v254_v35 = vpop.f32.mrf.mxu3  ;;  %v215_v39 = vadd.f32 %v214_v36, %v146_v22  ;;  %v228_v40 = vpop.f32.mrf.mxu1  ;;  %v241_v44 = vadd.f32 %v240_v32, %v148_v34 }
  0xb0   :  { %v229_v41 = vadd.f32 %v228_v40, %v147_v19  ;;  %v255_v47 = vadd.f32 %v254_v35, %v149_v38  ;;  %v346_v19 = vperm.slane %v344_v16, 0 }
  0xb1   :  { %v263_v42 = vmul.f32 0.01, %v215_v39  ;;  %v261_v52 = vmul.f32 0.01, %v241_v44 }
  0xb2   :  { %v264_v45 = vmul.f32 0.01, %v229_v41  ;;  %v262_v56 = vmul.f32 0.01, %v255_v47 }
  0xb3   :  { %v271_v48 = vmax.f32 %v215_v39, %v263_v42  ;;  %v269_v60 = vmax.f32 %v241_v44, %v261_v52 }
  0xb4   :  { %v272_v49 = vmax.f32 %v229_v41, %v264_v45  ;;  %v270_v62 = vmax.f32 %v255_v47, %v262_v56 }
  0xb5   :  { %v275_v51 = vpack.c.bf16 %v271_v48, %v267_v46 }
  0xb6   :  { %v242_v50 = vpop.f32.mrf.mxu2  ;;  %v276_v55 = vpack.c.bf16 %v272_v49, %v268_v43 }
  0xb7   :  { %v243_v53 = vadd.f32 %v242_v50, %v148_v34  ;;  %v256_v54 = vpop.f32.mrf.mxu3  ;;  %678 = vmatmul.bf16.vlgmr.msrb.gmra.mxu0 %v275_v51  ;;  %v347_v34 = vperm.slane %v344_v16, 1 }
  0xb8   :  { %v257_v57 = vadd.f32 %v256_v54, %v149_v38  ;;  %692 = vmatmul.bf16.vlgmr.msrb.gmra.mxu1 %v276_v55  ;;  %921 = vmatpush.bf16.msrb.mxu0 %v1632_v2  ;;  %v1645_v2 = vld [vmem:[#allocation9 + $0x20] sm:$0xff] }
  0xb9   :  { %v265_v58 = vmul.f32 0.01, %v243_v53  ;;  %935 = vmatpush.bf16.msrb.mxu1 %v1640_v7  ;;  %v1656_v7 = vld [vmem:[#allocation10 + $0x38] sm:$0xff] }
  0xba   :  { %v266_v59 = vmul.f32 0.01, %v257_v57 }
  0xbb   :  { %v273_v61 = vmax.f32 %v243_v53, %v265_v58 }
  0xbc   :  { %v274_v63 = vmax.f32 %v257_v57, %v266_v59  ;;  %922 = vmatpush.bf16.msrb.mxu0 %v1631_v3  ;;  %v1644_v3 = vld [vmem:[#allocation9 + $0x18] sm:$0xff] }
  0xbd   :  { %v277_v0 = vpack.c.bf16 %v273_v61, %v269_v60  ;;  %936 = vmatpush.bf16.msrb.mxu1 %v1639_v9  ;;  %v1654_v9 = vld [vmem:[#allocation10 + $0x28] sm:$0xff] }
  0xbe   :  { %v278_v1 = vpack.c.bf16 %v274_v63, %v270_v62  ;;  %v1648_v63 = vld [vmem:[#allocation9 + $0x38] sm:$0xff] }
  0xbf   :  { %706 = vmatmul.bf16.vlgmr.msrb.gmra.mxu2 %v277_v0 }
  0xc0   :  { %720 = vmatmul.bf16.vlgmr.msrb.gmra.mxu3 %v278_v1  ;;  %923 = vmatpush.bf16.msrb.mxu0 %v1630_v4  ;;  %v1643_v4 = vld [vmem:[#allocation9 + $0x10] sm:$0xff] }
  0xc1   :  { %937 = vmatpush.bf16.msrb.mxu1 %v1638_v11  ;;  %1019 = vmatpush.bf16.msrb.mxu2 %v1648_v63  ;;  %v1653_v11 = vld [vmem:[#allocation10 + $0x20] sm:$0xff] }
  0xc2   :  { %1103 = vmatpush.bf16.msrb.mxu3 %v1656_v7 }
  0xc4   :  { %924 = vmatpush.bf16.msrb.mxu0 %v1629_v5  ;;  %v1642_v5 = vld [vmem:[#allocation9 + $0x8] sm:$0xff] }
  0xc5   :  { %938 = vmatpush.bf16.msrb.mxu1 %v1637_v13 }
  0xc7   :  { %734 = vmatmul.bf16.vlgmr.msra.gmra.mxu0 %v275_v51 }
  0xc8   :  { %748 = vmatmul.bf16.vlgmr.msra.gmra.mxu1 %v276_v55  ;;  %925 = vmatpush.bf16.msrb.mxu0 %v1628_v6  ;;  %v1641_v6 = vld [vmem:[#allocation9] sm:$0xff] }
  0xc9   :  { %939 = vmatpush.bf16.msrb.mxu1 %v1636_v15 }
  0xcc   :  { %926 = vmatpush.bf16.msrb.mxu0 %v1627_v8  ;;  %v1655_v8 = vld [vmem:[#allocation10 + $0x30] sm:$0xff] }
  0xcd   :  { %940 = vmatpush.bf16.msrb.mxu1 %v1635_v17  ;;  %1104 = vmatpush.bf16.msrb.mxu3 %v1655_v8 }
  0xcf   :  { %762 = vmatmul.bf16.vlgmr.msra.gmra.mxu2 %v277_v0  ;;  %v1647_v0 = vld [vmem:[#allocation9 + $0x30] sm:$0xff] }
  0xd0   :  { %776 = vmatmul.bf16.vlgmr.msra.gmra.mxu3 %v278_v1  ;;  %927 = vmatpush.bf16.msrb.mxu0 %v1626_v10  ;;  %v1646_v1 = vld [vmem:[#allocation9 + $0x28] sm:$0xff] }
  0xd1   :  { %941 = vmatpush.bf16.msrb.mxu1 %v1634_v20  ;;  %1020 = vmatpush.bf16.msrb.mxu2 %v1647_v0 }
  0xd2   :  { %1105 = vmatpush.bf16.msrb.mxu3 %v1654_v9 }
  0xd4   :  { %928 = vmatpush.bf16.msrb.mxu0 %v1625_v12  ;;  %v824_v12 = vld [vmem:[#allocation12 + $0x2] ss:$0 sm:$0xff] }
  0xd5   :  { %942 = vmatpush.bf16.msrb.mxu1 %v1633_v23  ;;  %1021 = vmatpush.bf16.msrb.mxu2 %v1646_v1 }
  0xd6   :  { %1106 = vmatpush.bf16.msrb.mxu3 %v1653_v11 }
  0xd9   :  { %1022 = vmatpush.bf16.msrb.mxu2 %v1645_v2 }
  0xdd   :  { %1023 = vmatpush.bf16.msrb.mxu2 %v1644_v3 }
  0xe1   :  { %1024 = vmatpush.bf16.msrb.mxu2 %v1643_v4 }
  0xe5   :  { %1025 = vmatpush.bf16.msrb.mxu2 %v1642_v5 }
  0xe9   :  { %1026 = vmatpush.bf16.msrb.mxu2 %v1641_v6 }
 0x134   :  { %v679_v14 = vpop.f32.mrf.mxu0 }
 0x135   :  { %v693_v18 = vpop.f32.mrf.mxu1  ;;  %v680_v22 = vadd.f32 %v679_v14, %v346_v19 }
 0x137   :  { %v694_v25 = vadd.f32 %v693_v18, %v680_v22 }
 0x13c   :  { %v681_v21 = vpop.f32.mrf.mxu0 }
 0x13d   :  { %v695_v27 = vpop.f32.mrf.mxu1  ;;  %v682_v28 = vadd.f32 %v681_v21, %v346_v19 }
 0x13f   :  { %v696_v31 = vadd.f32 %v695_v27, %v682_v28  ;;  %v1650_v27 = vld [vmem:[#allocation10 + $0x8] sm:$0xff]  ;;  %v1649_v28 = vld [vmem:[#allocation10] sm:$0xff] }
 0x142   :  { %v707_v24 = vpop.f32.mrf.mxu2 }
 0x143   :  { %v721_v26 = vpop.f32.mrf.mxu3  ;;  %v708_v29 = vadd.f32 %v707_v24, %v694_v25  ;;  %v1652_v25 = vld [vmem:[#allocation10 + $0x18] sm:$0xff] }
 0x144   :  { %v735_v30 = vpop.f32.mrf.mxu0  ;;  %1107 = vmatpush.bf16.msrb.mxu3 %v1652_v25 }
 0x145   :  { %v722_v32 = vadd.f32 %v721_v26, %v708_v29  ;;  %v749_v39 = vpop.f32.mrf.mxu1  ;;  %v736_v40 = vadd.f32 %v735_v30, %v347_v34  ;;  %v1651_v26 = vld [vmem:[#allocation10 + $0x10] sm:$0xff]  ;;  %v970_v30 = vld [vmem:[#allocation12 + $0x3] ss:$0 sm:$0xff] }
 0x147   :  { %v782_v37 = vmul.f32 0.01, %v722_v32  ;;  %v750_v46 = vadd.f32 %v749_v39, %v736_v40  ;;  %v1054_v39 = vld [vmem:[#allocation12 + $0x4] ss:$0 sm:$0xff] }
 0x148   :  { %1108 = vmatpush.bf16.msrb.mxu3 %v1651_v26 }
 0x149   :  { %v786_v42 = vmax.f32 %v722_v32, %v782_v37 }
 0x14a   :  { %v709_v33 = vpop.f32.mrf.mxu2 }
 0x14b   :  { %v710_v35 = vadd.f32 %v709_v33, %v696_v31  ;;  %v723_v36 = vpop.f32.mrf.mxu3 }
 0x14c   :  { %v737_v44 = vpop.f32.mrf.mxu0  ;;  %1109 = vmatpush.bf16.msrb.mxu3 %v1650_v27 }
 0x14d   :  { %v724_v38 = vadd.f32 %v723_v36, %v710_v35  ;;  %v738_v49 = vadd.f32 %v737_v44, %v347_v34  ;;  %v751_v51 = vpop.f32.mrf.mxu1 }
 0x14f   :  { %v784_v41 = vmul.f32 0.01, %v724_v38  ;;  %v752_v52 = vadd.f32 %v751_v51, %v738_v49 }
 0x150   :  { %1110 = vmatpush.bf16.msrb.mxu3 %v1649_v28 }
 0x151   :  { %v788_v43 = vmax.f32 %v724_v38, %v784_v41 }
 0x152   :  { %v763_v45 = vpop.f32.mrf.mxu2 }
 0x153   :  { %v790_v47 = vpack.c.bf16 %v788_v43, %v786_v42  ;;  %v777_v48 = vpop.f32.mrf.mxu3  ;;  %v764_v50 = vadd.f32 %v763_v45, %v750_v46 }
 0x155   :  { %929 = vmatmul.bf16.vlgmr.msrb.gmra.mxu0 %v790_v47  ;;  %v778_v53 = vadd.f32 %v777_v48, %v764_v50 }
 0x157   :  { %v783_v57 = vmul.f32 0.01, %v778_v53 }
 0x159   :  { %v787_v60 = vmax.f32 %v778_v53, %v783_v57 }
 0x15a   :  { %v765_v54 = vpop.f32.mrf.mxu2 }
 0x15b   :  { %v766_v55 = vadd.f32 %v765_v54, %v752_v52  ;;  %v779_v56 = vpop.f32.mrf.mxu3 }
 0x15d   :  { %v780_v58 = vadd.f32 %v779_v56, %v766_v55 }
 0x15f   :  { %v785_v59 = vmul.f32 0.01, %v780_v58 }
 0x161   :  { %v789_v61 = vmax.f32 %v780_v58, %v785_v59 }
 0x163   :  { %v791_v62 = vpack.c.bf16 %v789_v61, %v787_v60 }
 0x165   :  { %943 = vmatmul.bf16.vlgmr.msrb.gmra.mxu1 %v791_v62 }
 0x1d2   :  { %v930_v10 = vpop.f32.mrf.mxu0 }
 0x1d3   :  { %v931_v14 = vadd.f32 %v930_v10, %v824_v12 }
 0x1da   :  { %v932_v15 = vpop.f32.mrf.mxu0 }
 0x1db   :  { %v933_v17 = vadd.f32 %v932_v15, %v824_v12 }
 0x1e2   :  { %v944_v13 = vpop.f32.mrf.mxu1 }
 0x1e3   :  { %v945_v16 = vadd.f32 %v944_v13, %v931_v14 }
 0x1e5   :  { %v949_v19 = vmul.f32 0.01, %v945_v16 }
 0x1e7   :  { %v951_v22 = vmax.f32 %v945_v16, %v949_v19 }
 0x1ea   :  { %v946_v18 = vpop.f32.mrf.mxu1 }
 0x1eb   :  { %v947_v20 = vadd.f32 %v946_v18, %v933_v17 }
 0x1ed   :  { %v950_v21 = vmul.f32 0.01, %v947_v20 }
 0x1ef   :  { %v952_v23 = vmax.f32 %v947_v20, %v950_v21 }
 0x1f1   :  { %v953_v24 = vpack.c.bf16 %v952_v23, %v951_v22 }
 0x1f3   :  { %1027 = vmatmul.bf16.vlgmr.msrb.gmra.mxu2 %v953_v24 }
 0x276   :  { %v1028_v29 = vpop.f32.mrf.mxu2 }
 0x277   :  { %v1029_v31 = vadd.f32 %v1028_v29, %v970_v30 }
 0x279   :  { %v1033_v33 = vmul.f32 0.01, %v1029_v31 }
 0x27b   :  { %v1035_v36 = vmax.f32 %v1029_v31, %v1033_v33 }
 0x27e   :  { %v1030_v32 = vpop.f32.mrf.mxu2 }
 0x27f   :  { %v1031_v34 = vadd.f32 %v1030_v32, %v970_v30 }
 0x281   :  { %v1034_v35 = vmul.f32 0.01, %v1031_v34 }
 0x283   :  { %v1036_v37 = vmax.f32 %v1031_v34, %v1034_v35 }
 0x285   :  { %v1037_v38 = vpack.c.bf16 %v1036_v37, %v1035_v36 }
 0x287   :  { %1111 = vmatmul.bf16.vlgmr.msrb.gmra.mxu3 %v1037_v38 }
 0x30a   :  { %v1112_v40 = vpop.f32.mrf.mxu3 }
 0x30b   :  { %v1113_v41 = vadd.f32 %v1112_v40, %v1054_v39 }
 0x30d   :  { %1118 = vst.msk [vmem:[%s1949_s7] sm:$0xff] %vm1117_vm1, %v1113_v41 }
 0x312   :  { %v1114_v42 = vpop.f32.mrf.mxu3 }
 0x313   :  { %v1115_v43 = vadd.f32 %v1114_v42, %v1054_v39 }
 0x315   :  { %1119 = vst.msk [vmem:[%s1949_s7 + $0x8] sm:$0xff] %vm1117_vm1, %v1115_v43 }
 0x316   :  { %1124 = vsyncpa [#allocation3], 1 }
 0x317   :  { %1125 = vsyncpa [#allocation5], 1 }
 0x318   :  { %1126 = vsyncpa [#allocation8], 1 }
 0x319   :  { %1127 = vsyncpa [#allocation11], 1 }

</bundles_post_ra>
